<compile_context>
chip_gen: v6e
topology: v6e:2x2x1
jax: 0.10.0
libtpu: 0.0.40
codegen_flags: <defaults>
</compile_context>

<pallas_src>
import functools

import jax
import jax.numpy as jnp
from jax.experimental import pallas as pl
from jax.experimental.pallas import tpu as pltpu


def _ln_kernel(x_ref, p_ref, *rest, bias_free: bool, fuse_modulate: bool,
               eps: float, inv_c: float):
    """LayerNorm over the channel (sublane) axis of a (1, C, TILE_S) tile.

    p_ref: (C, 2) packed [weight, bias] (bias column ignored for BiasFree).
    Optional m_ref: (1, C, 2) packed [shift, scale] for the fused modulate.

    WithBias:  (x - mu) / sqrt(var + eps) * weight + bias
    BiasFree:   x       / sqrt(var + eps) * weight   (var still mean-centered;
                this matches the Restormer/PyTorch reference -- intentional.)
    """
    if fuse_modulate:
        m_ref, o_ref = rest
    else:
        (o_ref,) = rest
        m_ref = None

    # ---- statistics (one pass) -------------------------------------------
    xf = x_ref[0].astype(jnp.float32)                     # (C, TS)
    s1 = jnp.sum(xf, axis=0, keepdims=True)               # (1, TS)
    s2 = jnp.sum(xf * xf, axis=0, keepdims=True)          # (1, TS)
    mu = s1 * inv_c
    var = jnp.maximum(s2 * inv_c - mu * mu, 0.0)          # guard fp cancellation
    inv = jax.lax.rsqrt(var + eps)                        # (1, TS)

    # ---- normalize + affine (re-read x: keeps one fewer f32 slab live) ----
    p = p_ref[...].astype(jnp.float32)                    # (C, 2)
    w = p[:, 0:1]                                         # (C, 1)
    x2 = x_ref[0].astype(jnp.float32)                     # (C, TS)
    if bias_free:
        y = x2 * (inv * w)
    else:
        b = p[:, 1:2]                                     # (C, 1)
        y = (x2 - mu) * (inv * w) + b

    # ---- fused adaLN modulate epilogue -------------------------------------
    if fuse_modulate:
        m = m_ref[0].astype(jnp.float32)                  # (C, 2)
        shift = m[:, 0:1]
        scale1p = 1.0 + m[:, 1:2]
        y = y * scale1p + shift

    o_ref[0] = y.astype(o_ref.dtype)


def _tpu_vmem_capacity_bytes():
    """Physical per-core VMEM; conservative 64 MiB fallback (v7x-safe)."""
    try:
        info = pltpu.get_tpu_info()
        cap = getattr(info, "vmem_capacity_bytes", None)
        if cap:
            return int(cap)
    except Exception:
        pass
    return 64 * 1024 * 1024


def _pick_tile_s(s, c, itemsize, *, vmem_capacity, max_lanes=16384):
    """Largest lane-aligned spatial tile within a generation-aware budget.

    Streaming bytes per spatial lane:
      2x double-buffered input + 2x double-buffered output (native dtype)
      + ~3 C x TILE_S f32 temporaries materialized inside the kernel body.
    Fixed (grid-invariant) cost: two packed per-channel operands, each padded
    to (C, 128) f32 and double-buffered.
    """
    vmem_limit = min(vmem_capacity * 3 // 4, 64 * 1024 * 1024)
    fixed_params = 2 * 2 * c * 128 * 4
    budget = max(vmem_limit * 5 // 8 - fixed_params, 2 * 1024 * 1024)

    per_lane = 4 * c * itemsize + 3 * c * 4
    fit = max(budget // per_lane, 128)
    target = int(min(max_lanes, fit))
    if s <= target:
        tile_s = s                       # single block: full extent is legal
    else:
        tile_s = max((target // 128) * 128, 128)
    return tile_s, int(vmem_limit)


def _layernorm_channel(x3d, weight, bias, mod, *, bias_free: bool,
                       eps: float = 1e-5, tile_s: int | None = None):
    """LayerNorm over axis 1 of x3d (B, C, S), optional fused modulate."""
    bsz, c, s = x3d.shape
    itemsize = jnp.dtype(x3d.dtype).itemsize
    vmem_cap = _tpu_vmem_capacity_bytes()
    auto_tile, vmem_limit = _pick_tile_s(s, c, itemsize, vmem_capacity=vmem_cap)

    if tile_s is None:
        tile_s = auto_tile
        # v7x has 2 TensorCores/chip: make sure the grid has >= 2 blocks so
        # neither core idles (costs nothing on single-TC v5e/v6e).
        if bsz * ((s + tile_s - 1) // tile_s) < 2 and s > 128:
            half = ((s + 255) // 256) * 128            # ~ceil(S/2), lane-aligned
            tile_s = min(tile_s, half)

    grid = (bsz, pl.cdiv(s, tile_s))

    x_spec = pl.BlockSpec((1, c, tile_s), lambda b, si: (b, 0, si))

    # Packed per-channel LN params: col 0 = weight, col 1 = bias (zeros if
    # BiasFree) -- one lane-padded VMEM block instead of two.
    b_arr = bias if bias is not None else jnp.zeros_like(weight)
    wb = jnp.stack([weight.astype(jnp.float32), b_arr.astype(jnp.float32)],
                   axis=-1)                                           # (C, 2)
    p_spec = pl.BlockSpec((c, 2), lambda b, si: (0, 0))

    in_specs = [x_spec, p_spec]
    args = [x3d, wb]

    fuse_modulate = mod is not None
    if fuse_modulate:
        in_specs.append(pl.BlockSpec((1, c, 2), lambda b, si: (b, 0, 0)))
        args.append(mod)

    kernel = functools.partial(_ln_kernel, bias_free=bias_free,
                               fuse_modulate=fuse_modulate, eps=eps,
                               inv_c=1.0 / c)

    cost = pl.CostEstimate(
        flops=(9 if fuse_modulate else 7) * bsz * c * s,
        transcendentals=bsz * s,
        bytes_accessed=2 * bsz * c * s * itemsize + 4 * c * 4 + 2 * bsz * c * 4,
    )

    # TODO(synk): if profiling on v7x shows exposed DMA for strided C-row
    # copies when tile_s < S, bump x_spec to pipeline_mode=pl.Buffered(3).
    return pl.pallas_call(
        kernel,
        out_shape=jax.ShapeDtypeStruct((bsz, c, s), x3d.dtype),
        grid_spec=pltpu.PrefetchScalarGridSpec(
            num_scalar_prefetch=0,
            grid=grid,
            in_specs=in_specs,
            out_specs=x_spec,
        ),
        compiler_params=pltpu.CompilerParams(
            dimension_semantics=("parallel", "parallel"),
            vmem_limit_bytes=vmem_limit,
        ),
        cost_estimate=cost,
    )(*args)


def layernorm_nchw(x, weight, bias=None, layernorm_type="WithBias",
                   tile_s=None):
    """Equivalent of LayerNorm(dim, LayerNorm_type).forward(x) for NCHW x.

    No transposes: to_3d/to_4d + LayerNorm(last dim) is mathematically the
    same as normalizing over the channel axis of (B, C, H*W).
    """
    b, c, h, w = x.shape
    x3 = x.reshape(b, c, h * w)
    y3 = _layernorm_channel(
        x3, weight, bias, None,
        bias_free=(layernorm_type == "BiasFree"), tile_s=tile_s)
    return y3.reshape(b, c, h, w)


def layernorm_modulate_nchw(x, weight, bias, shift, scale,
                            layernorm_type="WithBias", tile_s=None):
    """Fused `modulate(LayerNorm(x), shift, scale)` for NCHW x.

    shift, scale: (B, C) per-batch, per-channel adaLN parameters, exactly the
    pattern of TransformerBlock (norm1/norm2 + modulate) and FinalLayer.
    """
    b, c, h, w = x.shape
    x3 = x.reshape(b, c, h * w)
    mod = jnp.stack([shift.astype(jnp.float32), scale.astype(jnp.float32)],
                    axis=-1)                                          # (B, C, 2)
    y3 = _layernorm_channel(
        x3, weight, bias, mod,
        bias_free=(layernorm_type == "BiasFree"), tile_s=tile_s)
    return y3.reshape(b, c, h, w)


def _reference_layernorm_nchw(x, weight, bias, layernorm_type):
    """Pure-JAX reference mirroring the PyTorch module."""
    xf = x.astype(jnp.float32)
    mu = jnp.mean(xf, axis=1, keepdims=True)
    var = jnp.mean((xf - mu) ** 2, axis=1, keepdims=True)
    inv = jax.lax.rsqrt(var + 1e-5)
    wc = weight.reshape(1, -1, 1, 1)
    if layernorm_type == "BiasFree":
        y = xf * inv * wc
    else:
        y = (xf - mu) * inv * wc + bias.reshape(1, -1, 1, 1)
    return y.astype(x.dtype)


# TODO(synk): the remaining DiT_incontext_revise modules (3x3 / depthwise
# convs, window attention, qkv/proj linears, timestep-embedder MLP) are left
# to XLA; this kernel covers the Restormer LayerNorm (+ fused adaLN modulate)
# used in every TransformerBlock and in FinalLayer.

if __name__ == "__main__":
    key = jax.random.PRNGKey(0)
    kx, kw, kb, ksh, ksc, kx2 = jax.random.split(key, 6)

    B, C, H, W = 2, 32, 16, 16
    x = jax.random.normal(kx, (B, C, H, W), dtype=jnp.float32)

    # Module __init__ uses ones/zeros; perturb so scale/shift is exercised.
    weight = jnp.ones((C,), jnp.float32) + 0.1 * jax.random.normal(kw, (C,))
    bias = jnp.zeros((C,), jnp.float32) + 0.1 * jax.random.normal(kb, (C,))
    # adaLN modulate parameters (per batch, per channel), as in FinalLayer.
    shift = 0.2 * jax.random.normal(ksh, (B, C), dtype=jnp.float32)
    scale = 0.2 * jax.random.normal(ksc, (B, C), dtype=jnp.float32)

    ok = True

    # Plain LayerNorm, both flavors.
    for ln_type in ("WithBias", "BiasFree"):
        out = jax.block_until_ready(layernorm_nchw(x, weight, bias, ln_type))
        ref = _reference_layernorm_nchw(x, weight, bias, ln_type)
        ok &= out.shape == (B, C, H, W)
        ok &= bool(jnp.allclose(out, ref, atol=1e-4, rtol=1e-4))

    # Fused LayerNorm + adaLN modulate (TransformerBlock / FinalLayer pattern).
    outm = jax.block_until_ready(
        layernorm_modulate_nchw(x, weight, bias, shift, scale, "WithBias"))
    refm = _reference_layernorm_nchw(x, weight, bias, "WithBias")
    refm = refm * (1.0 + scale[:, :, None, None]) + shift[:, :, None, None]
    ok &= outm.shape == (B, C, H, W)
    ok &= bool(jnp.allclose(outm, refm, atol=1e-4, rtol=1e-4))

    # Multi-tile + ragged-last-block path (S = 576 = 4*128 + 64).
    H2, W2 = 24, 24
    x2 = jax.random.normal(kx2, (1, C, H2, W2), dtype=jnp.float32)
    out2 = jax.block_until_ready(
        layernorm_nchw(x2, weight, bias, "WithBias", tile_s=128))
    ref2 = _reference_layernorm_nchw(x2, weight, bias, "WithBias")
    ok &= out2.shape == (1, C, H2, W2)
    ok &= bool(jnp.allclose(out2, ref2, atol=1e-4, rtol=1e-4))

    # Auto-tiled B=1 case (exercises the >=2-block split for v7x).
    out3 = jax.block_until_ready(layernorm_nchw(x2, weight, bias, "WithBias"))
    ok &= bool(jnp.allclose(out3, ref2, atol=1e-4, rtol=1e-4))

    print("KERNEL_OK" if ok else "KERNEL_MISMATCH")
</pallas_src>

<mosaic_0001>
module attributes {stable_mosaic.version = 11 : i64} {
  func.func @_ln_kernel(%arg0: i32, %arg1: i32, %arg2: memref<1x32x256xf32, #tpu.memory_space<vmem>>, %arg3: memref<32x2xf32, #tpu.memory_space<vmem>>, %arg4: memref<1x32x256xf32, #tpu.memory_space<vmem>>) attributes {dimension_semantics = [#tpu.dimension_semantics<parallel>, #tpu.dimension_semantics<parallel>], iteration_bounds = array<i64: 2, 1>, scalar_prefetch = 0 : i64, scratch_operands = 0 : i64, tpu.core_type = #tpu.core_type<tc>, window_params = [{transform_indices = @transform_0, window_bounds = array<i64: 1, 32, 256>}, {pipeline_mode = #tpu.pipeline_mode<synchronous>, transform_indices = @transform_1, window_bounds = array<i64: 32, 2>}, {transform_indices = @transform_2, window_bounds = array<i64: 1, 32, 256>}]} {
    %c0 = arith.constant 0 : index
    %c0_0 = arith.constant 0 : index
    %c0_1 = arith.constant 0 : index
    %0 = vector.load %arg2[%c0, %c0_0, %c0_1] : memref<1x32x256xf32, #tpu.memory_space<vmem>>, vector<1x32x256xf32>
    %1 = vector.shape_cast %0 : vector<1x32x256xf32> to vector<32x256xf32>
    %cst = arith.constant dense<0.000000e+00> : vector<256xf32>
    %2 = vector.multi_reduction <add>, %1, %cst [0] : vector<32x256xf32> to vector<256xf32>
    %3 = vector.shape_cast %2 : vector<256xf32> to vector<1x256xf32>
    %4 = arith.mulf %1, %1 : vector<32x256xf32>
    %cst_2 = arith.constant dense<0.000000e+00> : vector<256xf32>
    %5 = vector.multi_reduction <add>, %4, %cst_2 [0] : vector<32x256xf32> to vector<256xf32>
    %6 = vector.shape_cast %5 : vector<256xf32> to vector<1x256xf32>
    %cst_3 = arith.constant 3.125000e-02 : f32
    %7 = vector.broadcast %cst_3 : f32 to vector<1x256xf32>
    %8 = arith.mulf %3, %7 : vector<1x256xf32>
    %cst_4 = arith.constant 3.125000e-02 : f32
    %9 = vector.broadcast %cst_4 : f32 to vector<1x256xf32>
    %10 = arith.mulf %6, %9 : vector<1x256xf32>
    %11 = arith.mulf %8, %8 : vector<1x256xf32>
    %12 = arith.subf %10, %11 : vector<1x256xf32>
    %cst_5 = arith.constant 0.000000e+00 : f32
    %13 = vector.broadcast %cst_5 : f32 to vector<1x256xf32>
    %14 = arith.maximumf %12, %13 : vector<1x256xf32>
    %cst_6 = arith.constant 9.99999974E-6 : f32
    %15 = vector.broadcast %cst_6 : f32 to vector<1x256xf32>
    %16 = arith.addf %14, %15 : vector<1x256xf32>
    %17 = math.rsqrt %16 : vector<1x256xf32>
    %c0_7 = arith.constant 0 : index
    %c0_8 = arith.constant 0 : index
    %18 = vector.load %arg3[%c0_7, %c0_8] : memref<32x2xf32, #tpu.memory_space<vmem>>, vector<32x2xf32>
    %19 = vector.extract_strided_slice %18 {offsets = [0, 0], sizes = [32, 1], strides = [1, 1]} : vector<32x2xf32> to vector<32x1xf32>
    %c0_9 = arith.constant 0 : index
    %c0_10 = arith.constant 0 : index
    %c0_11 = arith.constant 0 : index
    %20 = vector.load %arg2[%c0_9, %c0_10, %c0_11] : memref<1x32x256xf32, #tpu.memory_space<vmem>>, vector<1x32x256xf32>
    %21 = vector.shape_cast %20 : vector<1x32x256xf32> to vector<32x256xf32>
    %22 = vector.extract_strided_slice %18 {offsets = [0, 1], sizes = [32, 1], strides = [1, 1]} : vector<32x2xf32> to vector<32x1xf32>
    %23 = vector.broadcast %8 : vector<1x256xf32> to vector<32x256xf32>
    %24 = arith.subf %21, %23 : vector<32x256xf32>
    %25 = vector.broadcast %17 : vector<1x256xf32> to vector<32x256xf32>
    %26 = vector.broadcast %19 : vector<32x1xf32> to vector<32x256xf32>
    %27 = arith.mulf %25, %26 : vector<32x256xf32>
    %28 = arith.mulf %24, %27 : vector<32x256xf32>
    %29 = vector.broadcast %22 : vector<32x1xf32> to vector<32x256xf32>
    %30 = arith.addf %28, %29 : vector<32x256xf32>
    %c0_12 = arith.constant 0 : index
    %c0_13 = arith.constant 0 : index
    %c0_14 = arith.constant 0 : index
    %31 = vector.load %arg4[%c0_12, %c0_13, %c0_14] : memref<1x32x256xf32, #tpu.memory_space<vmem>>, vector<1x32x256xf32>
    %32 = vector.shape_cast %31 : vector<1x32x256xf32> to vector<32x256xf32>
    %33 = vector.shape_cast %30 : vector<32x256xf32> to vector<1x32x256xf32>
    tpu.vector_store %arg4[%c0_12, %c0_13, %c0_14], %33 {strides = array<i32>} : memref<1x32x256xf32, #tpu.memory_space<vmem>>, vector<1x32x256xf32>,
    return
  }
  func.func @transform_0(%arg0: i32, %arg1: i32) -> (i32, i32, i32) {
    %c0_i32 = arith.constant 0 : i32
    %c0_i32_0 = arith.constant 0 : i32
    return %arg0, %c0_i32, %arg1 : i32, i32, i32
  }
  func.func @transform_1(%arg0: i32, %arg1: i32) -> (i32, i32) {
    %c0_i32 = arith.constant 0 : i32
    %c0_i32_0 = arith.constant 0 : i32
    %c0_i32_1 = arith.constant 0 : i32
    return %c0_i32, %c0_i32_0 : i32, i32
  }
  func.func @transform_2(%arg0: i32, %arg1: i32) -> (i32, i32, i32) {
    %c0_i32 = arith.constant 0 : i32
    %c0_i32_0 = arith.constant 0 : i32
    return %arg0, %c0_i32, %arg1 : i32, i32, i32
  }
}

</mosaic_0001>

<bundles_post_ra>
// kernel: tpu_custom_call.1
= control target key start
LH: loop header
LB: loop body
LE: loop exit
PB: predicated region body
PF: predicated region fallthrough
CT: control target
= control target key end

     0   :  { %7 = vsyncpa [#allocation3], 0  ;;  %s877_s0 = inlined_call_operand.hbm [shape: f32[2,32,256], index: 0, kind: input, shape index: {}]   ;;  %s878_s1 = inlined_call_operand.vmem [shape: f32[32,2], index: 1, kind: input, shape index: {}]   ;;  %s879_s2 = inlined_call_operand.hbm [shape: f32[2,32,256], index: 2, kind: output, shape index: {}]  }
   0x1   :  { %9 = vsyncpa [#allocation3 + $0x1], 0 }
   0x2   :  { %10 = vsyncpa [#allocation4], 0 }
   0x3   :  { %12 = vsyncpa [#allocation4 + $0x1], 0  ;;  %s657_s9 = smov 0   ;;  %s659_s10 = smov 0  }
   0x4   :  { %s661_s11 = smov 0   ;;  %s663_s12 = smov 0  }
   0x5   :  { %s665_s13 = smov 0   ;;  %s667_s14 = smov 0  }
   0x6 LB: > { %s431_s15 = sadd.s32 4294967295, %s632_s14   ;;  %s432_s16 = sadd.s32 4294967294, %s632_s14   ;;  %s632_s14 = sphi %s667_s14, %s18_s14   ;;  %s628_s13 = sphi %s665_s13, %s890_s13   ;;  %s624_s12 = sphi %s663_s12, %s889_s12   ;;  %s620_s11 = sphi %s661_s11, %s888_s11   ;;  %s616_s10 = sphi %s659_s10, %s887_s10   ;;  %s612_s9 = sphi %s657_s9, %s886_s9  }
   0x7   : > { %s30_s17 = sadd.s32 1, %s628_s13  ;;  %s39_s18 = sadd.s32 1, %s620_s11 }
   0x8   : > { %p32_p0 = scmp.ge.s32.totalorder %s30_s17, 2  ;;  %p46_p1 = scmp.ne.s32.totalorder %s620_s11, %s616_s10 }
   0x9   : > { %p47_p2 = scmp.eq.s32.totalorder %s632_s14, 0  ;;  %p52_p3 = scmp.ne.s32.totalorder %s616_s10, %s612_s9 }
   0xa   : > { %s892_s17 = smov (%p32_p0, %s30_s17), 0  ;;  %p53_p5 = scmp.eq.s32.totalorder %s431_s15, 0 }
   0xb   : > { %p698_p4 = por %p47_p2, %p46_p1  ;;  %s34_s20 = ssub.s32 %s628_s13, %s892_s17 }
   0xc   : > { %p99_p6 = scmp.eq.s32.totalorder %s431_s15, 1  ;;  %p37_p7 = scmp.eq.s32.totalorder %s34_s20, 0 }
   0xd   : > { %p704_p8 = por %p53_p5, %p52_p3  ;;  %p105_p10 = scmp.eq.s32.totalorder %s432_s16, 1 }
   0xe   : > { %p708_p9 = por %p99_p6, %p46_p1  ;;  %p460_p13 = scmp.lt.s32.totalorder %s632_s14, 2 }
   0xf   : > { %s713_s23 = scalar_select %p37_p7, %s620_s11, %s39_s18  }
  0x10   : > { %p715_p11 = por %p105_p10, %p52_p3  ;;  %s128_s25 = sand.u32 1, %s620_s11  }
  0x11   : > { %s435_s26 = sshll.u32 %s128_s25, 6  ;;  %s446_s27 = sshll.u32 %s628_s13, 10 }
  0x12   : > { %s140_s30 = scalar_lea.hbm %s877_s0, %s446_s27  ;;  %s132_s3 = scalar_lea.vmem [#allocation2], %s435_s26 }
  0x13   : > { %s141_s4 = sshll.u32 %s132_s3, 4  ;;  %p728_p0 = pnand %p460_p13, %p698_p4  ;;  %s142_s4 = int_to_ptr.vmem [resolvable:$true] %s141_s4 }
  0x14   : > { %p438_p1 = scmp.ge.s32.totalorder %s632_s14, 1  ;;  %s129_s6 = scalar_lea.sflag [#allocation3], %s128_s25 }
  0x15   : > { %p526_p2 = pneg %p728_p0  ;;  %s537_s7 = scalar_lea.vmem %s142_s4, 1024 }
  0x16   : > { %p538_p3 = scmp.ne.s32.totalorder %s142_s4, %s537_s7  ;;  %s634_s8 = smov [#allocation2]  }
  0x17   : > { %s542_s15 = sshll.u32 %s634_s8, 4  ;;  %s543_s15 = int_to_ptr.vmem [resolvable:$false] %s542_s15 }
  0x18   : > { %p540_p5 = pnand %p538_p3, %p526_p2  ;;  %s544_s16 = scalar_lea.vmem %s543_s15, 2048 }
  0x19   : > { %p545_p7 = scmp.lt.s32.totalorder %s142_s4, %s543_s15  ;;  %p546_p10 = scmp.lt.s32.totalorder %s544_s16, %s537_s7 }
  0x1a   : > { %p541_p6 = pneg %p540_p5 }
  0x1b   : > { %p547_p12 = por %p546_p10, %p545_p7 }
  0x1d   : > { %p548_p4 = pnand %p547_p12, %p541_p6 }
  0x1f   : > { %551 = shalt.err (!%p548_p4)
}
  0x20   : > { %s635_s18 = smov 256   ;;  %s636_s19 = smov 16  }
  0x21   : > { %455 = dma.hbm_to_vmem [thread:$0]  (!%p728_p0), %s140_s30, 1024, %s142_s4, %s129_s6, %s635_s18, %s635_s18, %s636_s19  }
  0x22   : > { %p149_p13 = scmp.lt.s32.totalorder %s632_s14, 3 }
  0x24   : > { %p150_p2 = pnand %p438_p1, %p149_p13 }
  0x25   : > { %s741_s20 = sand.u32 (!%p150_p2), 1, %s616_s10  }
  0x26   : > { %153 = sbr.rel (%p150_p2) target bundleno = 200 (0xc8), region = 28  ;;  %s439_s25 = sshll.u32 (!%p150_p2), %s741_s20, 6 }
  0x27   : > { %s156_s26 = scalar_lea.sflag (!%p150_p2), [#allocation3], %s741_s20  ;;  %s747_s27 = scalar_lea.vmem (!%p150_p2), [#allocation2], %s439_s25 }
  0x2b   : > { %603 = dma.done.wait (%p704_p8), %s156_s26, 1024  }
  0x2c   : > { %605 = vsyncadd (%p704_p8), %s156_s26, 4294966272  ;;  %v637_v0 = vmov 0   ;;  %v250_v1 = vld [vmem:[%s878_s1 + $0x10] sm:$0xff]  ;;  %v248_v2 = vld [vmem:[%s878_s1] sm:$0xff]  ;;  %v638_v5 = vmov 1   ;;  %s179_s7 = scalar_lea.vmem [#allocation5], %s439_s25 }
  0x2d   : > { %517 = vset.pattern.permute.xlu1 %v637_v0  ;;  %516 = vset.pattern.permute.xlu0 %v637_v0  ;;  %v251_v3 = vld [vmem:[%s878_s1 + $0x18] sm:$0xff]  ;;  %v249_v4 = vld [vmem:[%s878_s1 + $0x8] sm:$0xff]  ;;  %v766_v6 = vld [vmem:[%s747_s27] sm:$0xff]  ;;  %s344_s8 = sshll.u32 %s179_s7, 4  ;;  %s447_s15 = sshll.u32 %s624_s12, 10  ;;  %s824_s8 = int_to_ptr.vmem [resolvable:$true] %s344_s8 }
  0x2e   : > { %272 = vperm.xlu1 %517, %v250_v1   ;;  %262 = vperm.xlu0 %516, %v248_v2   ;;  %v769_v7 = vld [vmem:[%s747_s27 + $0x10] sm:$0xff]  ;;  %v772_v8 = vld [vmem:[%s747_s27 + $0x8] sm:$0xff]  ;;  %v775_v9 = vld [vmem:[%s747_s27 + $0x18] sm:$0xff]  ;;  %v208_v11 = vmul.f32 %v766_v6, %v766_v6  ;;  %s829_s12 = scalar_lea.hbm %s879_s2, %s447_s15  ;;  %s329_s19 = scalar_lea.sflag [#allocation4], %s741_s20 }
  0x2f   : > { %v190_v10 = vadd.f32 %v769_v7, %v766_v6  ;;  %v210_v12 = vmul.f32 %v769_v7, %v769_v7  ;;  %v784_v13 = vld [vmem:[%s747_s27 + $0x20] sm:$0xff]  ;;  %v199_v14 = vadd.f32 %v775_v9, %v772_v8  ;;  %v209_v15 = vmul.f32 %v772_v8, %v772_v8  ;;  %v793_v17 = vld [vmem:[%s747_s27 + $0x28] sm:$0xff]  ;;  %v799_v21 = vld [vmem:[%s747_s27 + $0x30] sm:$0xff]  ;;  %s552_s25 = scalar_lea.vmem %s824_s8, 1024  ;;  %s639_s26 = smov [#allocation5]  }
  0x30   : > { %v211_v16 = vmul.f32 %v775_v9, %v775_v9  ;;  %v212_v19 = vmul.f32 %v784_v13, %v784_v13  ;;  %v213_v23 = vmul.f32 %v793_v17, %v793_v17  ;;  %v805_v25 = vld [vmem:[%s747_s27 + $0x38] sm:$0xff]  ;;  %v214_v27 = vmul.f32 %v799_v21, %v799_v21  ;;  %p553_p8 = scmp.ne.s32.totalorder %s824_s8, %s552_s25  ;;  %s556_s27 = sshll.u32 %s639_s26, 4  ;;  %s557_s27 = int_to_ptr.vmem [resolvable:$false] %s556_s27 }
  0x31   : > { %v191_v18 = vadd.f32 %v190_v10, %v784_v13  ;;  %v216_v20 = vadd.f32 %v210_v12, %v208_v11  ;;  %v200_v22 = vadd.f32 %v199_v14, %v793_v17  ;;  %v215_v30 = vmul.f32 %v805_v25, %v805_v25  ;;  %s558_s28 = scalar_lea.vmem %s557_s27, 2048  ;;  %p559_p1 = scmp.lt.s32.totalorder %s824_s8, %s557_s27 }
  0x32   : > { %277 = vperm.xlu1 %517, %v251_v3   ;;  %267 = vperm.xlu0 %516, %v249_v4   ;;  %v225_v24 = vadd.f32 %v211_v16, %v209_v15  ;;  %p554_p12 = pnand %p553_p8, %p708_p9  ;;  %p560_p3 = scmp.lt.s32.totalorder %s558_s28, %s552_s25 }
  0x33   : > { %v192_v26 = vadd.f32 %v191_v18, %v799_v21  ;;  %v217_v28 = vadd.f32 %v216_v20, %v212_v19  ;;  %v201_v29 = vadd.f32 %v200_v22, %v805_v25 }
  0x34   : > { %v226_v31 = vadd.f32 %v225_v24, %v213_v23  ;;  %p555_p0 = pneg %p554_p12  ;;  %p561_p5 = por %p560_p3, %p559_p1 }
  0x35   : > { %v193_v32 = vrot.slane %v192_v26, 4  ;;  %v218_v33 = vadd.f32 %v217_v28, %v214_v27  ;;  %v202_v34 = vrot.slane %v201_v29, 4 }
  0x36   : > { %519 = vset.pattern.permute.xlu1 %v638_v5  ;;  %518 = vset.pattern.permute.xlu0 %v638_v5  ;;  %v227_v35 = vadd.f32 %v226_v31, %v215_v30  ;;  %p562_p6 = pnand %p561_p5, %p555_p0 }
  0x37   : > { %301 = vperm.xlu1 %519, %v249_v4   ;;  %297 = vperm.xlu0 %518, %v248_v2   ;;  %v194_v36 = vadd.f32 %v193_v32, %v192_v26  ;;  %v219_v37 = vrot.slane %v218_v33, 4  ;;  %v203_v38 = vadd.f32 %v202_v34, %v201_v29 }
  0x38   : > { %v228_v39 = vrot.slane %v227_v35, 4 }
  0x39   : > { %v195_v40 = vrot.slane %v194_v36, 2  ;;  %v220_v41 = vadd.f32 %v219_v37, %v218_v33  ;;  %v204_v42 = vrot.slane %v203_v38, 2 }
  0x3a   : > { %v229_v43 = vadd.f32 %v228_v39, %v227_v35 }
  0x3b   : > { %305 = vperm.xlu1 %519, %v250_v1   ;;  %309 = vperm.xlu0 %518, %v251_v3   ;;  %v196_v44 = vadd.f32 %v195_v40, %v194_v36  ;;  %v221_v45 = vrot.slane %v220_v41, 2  ;;  %v205_v46 = vadd.f32 %v204_v42, %v203_v38 }
  0x3c   : > { %v230_v47 = vrot.slane %v229_v43, 2 }
  0x3d   : > { %v197_v48 = vrot.slane %v196_v44, 1  ;;  %v222_v49 = vadd.f32 %v221_v45, %v220_v41  ;;  %v206_v50 = vrot.slane %v205_v46, 1 }
  0x3e   : > { %v231_v51 = vadd.f32 %v230_v47, %v229_v43 }
  0x3f   : > { %v198_v52 = vadd.f32 %v197_v48, %v196_v44  ;;  %v223_v53 = vrot.slane %v222_v49, 1  ;;  %v207_v54 = vadd.f32 %v206_v50, %v205_v46 }
  0x40   : > { %v232_v55 = vrot.slane %v231_v51, 1 }
  0x41   : > { %v224_v56 = vadd.f32 %v223_v53, %v222_v49  ;;  %v234_v57 = vmul.f32 0.03125, %v198_v52  ;;  %v235_v59 = vmul.f32 0.03125, %v207_v54 }
  0x42   : > { %v233_v58 = vadd.f32 %v232_v55, %v231_v51 }
  0x43   : > { %v236_v60 = vmul.f32 0.03125, %v224_v56  ;;  %v238_v61 = vmul.f32 %v234_v57, %v234_v57  ;;  %v239_v63 = vmul.f32 %v235_v59, %v235_v59  ;;  %v254_v15 = vsub.f32 %v769_v7, %v234_v57 }
  0x44   : > { %v237_v62 = vmul.f32 0.03125, %v233_v58  ;;  %v255_v16 = vsub.f32 %v775_v9, %v235_v59  ;;  %v252_v23 = vsub.f32 %v766_v6, %v234_v57  ;;  %v253_v24 = vsub.f32 %v772_v8, %v235_v59 }
  0x45   : > { %v240_v0 = vsub.f32 %v236_v60, %v238_v61  ;;  %v256_v28 = vsub.f32 %v784_v13, %v234_v57  ;;  %v257_v29 = vsub.f32 %v793_v17, %v235_v59  ;;  %v258_v30 = vsub.f32 %v799_v21, %v234_v57 }
  0x46   : > { %v241_v1 = vsub.f32 %v237_v62, %v239_v63  ;;  %v259_v7 = vsub.f32 %v805_v25, %v235_v59 }
  0x47   : > { %v242_v2 = vmax.f32 %v240_v0, 0.0 }
  0x48   : > { %v243_v3 = vmax.f32 %v241_v1, 0.0 }
  0x49   : > { %v244_v4 = vadd.f32 1e-05, %v242_v2 }
  0x4a   : > { %v245_v5 = vadd.f32 1e-05, %v243_v3 }
  0x4b   : > { %520 = vrsqrt.f32 %v244_v4 }
  0x4c   : > { %522 = vrsqrt.f32 %v245_v5 }
  0x58   : > { %v521_v10 = vpop.eup %520 }
  0x59   : > { %v523_v14 = vpop.eup %522 }
  0xa9   : > { %v273_v11 = vpop.permute.xlu1 %272  ;;  %v263_v12 = vpop.permute.xlu0 %262 }
  0xaa   : > { %v280_v18 = vmul.f32 %v521_v10, %v263_v12  ;;  %v281_v19 = vmul.f32 %v523_v14, %v263_v12  ;;  %v284_v9 = vmul.f32 %v521_v10, %v273_v11  ;;  %v285_v31 = vmul.f32 %v523_v14, %v273_v11 }
  0xac   : > { %v288_v35 = vmul.f32 %v280_v18, %v252_v23  ;;  %v289_v36 = vmul.f32 %v281_v19, %v253_v24  ;;  %v292_v25 = vmul.f32 %v284_v9, %v256_v28  ;;  %v293_v39 = vmul.f32 %v285_v31, %v257_v29 }
  0xad   : > { %v278_v20 = vpop.permute.xlu1 %277  ;;  %v268_v22 = vpop.permute.xlu0 %267 }
  0xae   : > { %v282_v26 = vmul.f32 %v521_v10, %v268_v22  ;;  %v283_v27 = vmul.f32 %v523_v14, %v268_v22  ;;  %v286_v34 = vmul.f32 %v521_v10, %v278_v20  ;;  %v287_v6 = vmul.f32 %v523_v14, %v278_v20 }
  0xb0   : > { %v290_v32 = vmul.f32 %v282_v26, %v254_v15  ;;  %v291_v33 = vmul.f32 %v283_v27, %v255_v16  ;;  %v294_v40 = vmul.f32 %v286_v34, %v258_v30  ;;  %v295_v41 = vmul.f32 %v287_v6, %v259_v7 }
  0xb2   : > { %v302_v8 = vpop.permute.xlu1 %301  ;;  %v298_v13 = vpop.permute.xlu0 %297 }
  0xb3   : > { %v314_v37 = vadd.f32 %v302_v8, %v290_v32  ;;  %v315_v17 = vadd.f32 %v302_v8, %v291_v33  ;;  %v312_v38 = vadd.f32 %v298_v13, %v288_v35  ;;  %v313_v21 = vadd.f32 %v298_v13, %v289_v36 }
  0xb5   : > { %322 = vst [vmem:[%s179_s7 + $0x10] sm:$0xff] %v314_v37  ;;  %323 = vst [vmem:[%s179_s7 + $0x18] sm:$0xff] %v315_v17 }
  0xb6   : > { %320 = vst [vmem:[%s179_s7] sm:$0xff] %v312_v38  ;;  %321 = vst [vmem:[%s179_s7 + $0x8] sm:$0xff] %v313_v21  ;;  %v306_v42 = vpop.permute.xlu1 %305  ;;  %v310_v43 = vpop.permute.xlu0 %309 }
  0xb7   : > { %v316_v44 = vadd.f32 %v306_v42, %v292_v25  ;;  %v317_v45 = vadd.f32 %v306_v42, %v293_v39  ;;  %v318_v46 = vadd.f32 %v310_v43, %v294_v40  ;;  %v319_v47 = vadd.f32 %v310_v43, %v295_v41 }
  0xb9   : > { %324 = vst [vmem:[%s179_s7 + $0x20] sm:$0xff] %v316_v44  ;;  %325 = vst [vmem:[%s179_s7 + $0x28] sm:$0xff] %v317_v45 }
  0xba   : > { %326 = vst [vmem:[%s179_s7 + $0x30] sm:$0xff] %v318_v46  ;;  %327 = vst [vmem:[%s179_s7 + $0x38] sm:$0xff] %v319_v47 }
  0xbb   : > { %565 = shalt.err (!%p562_p6)
}
  0xbc   : > { %s566_s29 = scalar_lea.hbm %s829_s12, 1024  ;;  %s570_s4 = scalar_lea.hbm %s879_s2, 2048 }
  0xbd   : > { %p567_p7 = scmp.ne.s32.totalorder %s829_s12, %s566_s29  ;;  %p571_p13 = scmp.lt.s32.totalorder %s829_s12, %s879_s2 }
  0xbe   : > { %p572_p2 = scmp.lt.s32.totalorder %s570_s4, %s566_s29 }
  0xbf   : > { %p568_p10 = pnand %p567_p7, %p708_p9 }
  0xc0   : > { %p573_p8 = por %p572_p2, %p571_p13 }
  0xc1   : > { %p569_p4 = pneg %p568_p10 }
  0xc3   : > { %p574_p12 = pnand %p573_p8, %p569_p4 }
  0xc5   : > { %577 = shalt.err (!%p574_p12)
}
  0xc6   : > { %s640_s6 = smov 256   ;;  %s641_s7 = smov 16  }
  0xc7   : > { %450 = dma.vmem_to_hbm [thread:$0]  (%p708_p9), %s824_s8, 1024, %s829_s12, %s329_s19, %s640_s6, %s640_s6, %s641_s7  }
  0xc8 PF: > { %s359_s15 = sand.u32 1, %s612_s9   ;;  %p885_p0 = scmp.ge.s32.totalorder %s632_s14, 2 }
  0xc9   : > { %s360_s16 = scalar_lea.sflag [#allocation4], %s359_s15 }
  0xca   : > { %p457_p1 = pnand %p885_p0, %p715_p11 }
  0xcc   : > { %p458_p3 = pneg %p457_p1 }
  0xce   : > { %607 = dma.done.wait (%p458_p3), %s360_s16, 1024  }
  0xcf   : > { %609 = vsyncadd (%p458_p3), %s360_s16, 4294966272  ;;  %s18_s14 = sadd.s32 1, %s632_s14   ;;  %s886_s9 = smov %s616_s10 }
  0xd0   : > { %p15_p5 = scmp.ge.s32.totalorder %s18_s14, 4   ;;  %s887_s10 = smov %s620_s11 }
  0xd1   : > { %s888_s11 = smov %s713_s23  ;;  %s889_s12 = smov %s628_s13 }
  0xd2   : > { %s890_s13 = smov %s892_s17  ;;  %17 = sbr.rel (!%p15_p5) target bundleno = 6 (0x6), region = 73 }
  0xd7   :  { %365 = vsyncpa [#allocation3], 1 }
  0xd8   :  { %367 = vsyncpa [#allocation3 + $0x1], 1 }
  0xd9   :  { %368 = vsyncpa [#allocation4], 1 }
  0xda   :  { %370 = vsyncpa [#allocation4 + $0x1], 1 }

</bundles_post_ra>
